<compile_context>
chip_gen: v5e
topology: v5e:2x2
jax: 0.10.0
libtpu: 0.0.40
codegen_flags: <defaults>
</compile_context>

<pallas_src>
import jax
import jax.numpy as jnp
from jax.experimental import pallas as pl
from jax.experimental.pallas import tpu as pltpu


# ----------------------------- helpers ---------------------------------------
def _round_up(x, m):
    return (x + m - 1) // m * m


def _cdiv(a, b):
    return -(-a // b)


def _pick_tile_128(dim, target):
    """Largest multiple of 128 <= max(target,128) that divides dim (dim % 128 == 0)."""
    target = max(128, (target // 128) * 128)
    t = min(target, dim)
    while t > 128 and dim % t:
        t -= 128
    return t


# ----------------- one-time parameter folding (off the hot path) -------------
def fold_params(w, b):
    """Fold join/inverse_join permutations + transpose into the Linear params.

    w: (2K, 2K) torch-Linear weight (out_features, in_features); b: (2K,).
    Returns wt_fold (in_f_pad, out_f_pad) in bf16 so the kernel computes
    x @ wt_fold on the MXU's native path, and b_fold (1, out_f_pad) in f32;
    feature axes padded to multiples of 128 (lane-dense stores).
    """
    out_f, in_f = w.shape
    k = in_f // 2
    # contraction-axis (column) permutation: W_cp[:, r*K + q] = W[:, 2q + r]
    w_cp = w.reshape(out_f, k, 2).transpose(0, 2, 1).reshape(out_f, in_f)
    # output-axis (row) permutation: W_fold[p*K + j, :] = W_cp[2j + p, :]
    w_fold = w_cp.reshape(k, 2, in_f).transpose(1, 0, 2).reshape(out_f, in_f)
    b_fold = b.reshape(k, 2).T.reshape(out_f)

    wt = w_fold.T  # (in_f, out_f): kernel does x @ wt
    in_f_pad = _round_up(in_f, 128)
    out_f_pad = _round_up(out_f, 128)
    wt = jnp.pad(wt, ((0, in_f_pad - in_f), (0, out_f_pad - out_f)))
    b_fold = jnp.pad(b_fold, (0, out_f_pad - out_f))
    return wt.astype(jnp.bfloat16), b_fold.reshape(1, out_f_pad).astype(jnp.float32)


# --------------------- Pallas kernels: tiled Linear + ReLU -------------------
def _kernel_single_k(x_ref, wt_ref, b_ref, o_ref):
    # One K step: dot + bias + ReLU fused into a single store.
    prod = jnp.dot(x_ref[...].astype(jnp.bfloat16), wt_ref[...],
                   preferred_element_type=jnp.float32)
    o_ref[...] = jnp.maximum(prod + b_ref[...], 0.0).astype(o_ref.dtype)


def _kernel_multi_k(x_ref, wt_ref, b_ref, o_ref):
    # o_ref's index_map ignores k -> it stays VMEM-resident across the K axis
    # and doubles as the f32 accumulator (no scratch needed).
    k = pl.program_id(2)
    prod = jnp.dot(x_ref[...].astype(jnp.bfloat16), wt_ref[...],
                   preferred_element_type=jnp.float32)

    @pl.when(k == 0)
    def _():
        o_ref[...] = prod          # direct store of the first partial product

    @pl.when(k > 0)
    def _():
        o_ref[...] += prod

    @pl.when(k == pl.num_programs(2) - 1)
    def _():
        o_ref[...] = jnp.maximum(o_ref[...] + b_ref[...], 0.0).astype(o_ref.dtype)


def linear_relu(x, wt_bf16, b2d, *, tm_target=512, tk_target=512, tn_cap=1024):
    """y = relu(x @ wt + b), fused & tiled. wt_bf16: (in_f_pad, out_f_pad) bf16."""
    m, in_f = x.shape
    in_f_pad, out_f_pad = wt_bf16.shape

    # Zero-pad the contraction axis to match the pre-padded weight
    # (no-op when already aligned, as in the demo).
    if in_f != in_f_pad:
        x = jnp.pad(x, ((0, 0), (0, in_f_pad - in_f)))

    # Only pad M when m is not sublane-aligned (no-op for the demo).
    m_pad = _round_up(m, 8)
    if m != m_pad:
        x = jnp.pad(x, ((0, m_pad - m), (0, 0)))

    # ---- tile selection -----------------------------------------------------
    tm = min(_round_up(tm_target, 8), m_pad)
    # v7x (2 TCs/chip): prefer >=2 parallel M blocks when there is enough work
    # to amortize the extra weight re-read.
    if tm == m_pad and m_pad >= 256:
        tm = _round_up(m_pad // 2, 8)
    tk = _pick_tile_128(in_f_pad, tk_target)
    # Keep the whole output feature axis in one block whenever it fits
    # (out_f = 2*size, always small here) -> no x re-reads across N.
    tn = out_f_pad if out_f_pad <= tn_cap else _pick_tile_128(out_f_pad, 512)

    gm = _cdiv(m_pad, tm)          # last M block may be ragged (writes masked)
    gn = out_f_pad // tn
    gk = in_f_pad // tk
    grid = (gm, gn, gk)

    kernel = _kernel_single_k if gk == 1 else _kernel_multi_k

    y = pl.pallas_call(
        kernel,
        out_shape=jax.ShapeDtypeStruct((m_pad, out_f_pad), jnp.float32),
        grid_spec=pltpu.PrefetchScalarGridSpec(
            num_scalar_prefetch=0,
            grid=grid,
            in_specs=[
                pl.BlockSpec((tm, tk), lambda i, j, k: (i, k)),
                pl.BlockSpec((tk, tn), lambda i, j, k: (k, j)),
                pl.BlockSpec((1, tn), lambda i, j, k: (0, j)),  # bias resident
            ],
            out_specs=pl.BlockSpec((tm, tn), lambda i, j, k: (i, j)),
        ),
        compiler_params=pltpu.CompilerParams(
            dimension_semantics=("parallel", "parallel", "arbitrary")),
    )(x, wt_bf16, b2d)

    return y[:m] if m != m_pad else y


# ----------------------------- module equivalent -----------------------------
def literals_message_full(literals, wt_fold, b_fold):
    """Forward pass of LiteralsMessageFull with folded parameters."""
    two_n, k = literals.shape
    n = two_n // 2
    x = literals.reshape(n, 2 * k)          # free row-major view (replaces join)
    y = linear_relu(x, wt_fold, b_fold)     # single fused pallas_call
    if y.shape[1] != 2 * k:                 # drop feature padding (no-op if aligned)
        y = y[:, : 2 * k]
    return y.reshape(two_n, k)              # free view (replaces inverse_join)


# --------------------------- init (torch parity) -----------------------------
def init_params(key, size):
    # torch.nn.Linear(2*size, 2*size): weight (out, in), bias (out,), U(-1/sqrt(in), 1/sqrt(in))
    in_f = out_f = 2 * size
    kw, kb = jax.random.split(key)
    bound = 1.0 / jnp.sqrt(jnp.float32(in_f))
    w = jax.random.uniform(kw, (out_f, in_f), jnp.float32, -bound, bound)
    b = jax.random.uniform(kb, (out_f,), jnp.float32, -bound, bound)
    return w, b


# ------------------------ plain-JAX reference (for checks) -------------------
def join_literals_ref(x):
    two_n, k = x.shape
    n = two_n // 2
    return x.reshape(n, 2, k).transpose(0, 2, 1).reshape(n, 2 * k)


def inverse_join_literals_ref(x):
    n, two_k = x.shape
    k = two_k // 2
    return x.reshape(n, k, 2).transpose(0, 2, 1).reshape(2 * n, k)


if __name__ == "__main__":
    key = jax.random.PRNGKey(0)
    k_lit, k_par = jax.random.split(key)

    size = 64          # K (feature size per literal) -> Linear is 128 -> 128
    n_pairs = 8        # N variable pairs -> literals has 2N = 16 rows
    literals = jax.random.normal(k_lit, (2 * n_pairs, size), jnp.float32)

    w, b = init_params(k_par, size)          # original torch-Linear layout
    wt_fold, b_fold = fold_params(w, b)      # one-time fold (bf16 weight), off hot path

    fwd = jax.jit(literals_message_full)
    out = jax.block_until_ready(fwd(literals, wt_fold, b_fold))
    assert out.shape == (2 * n_pairs, size)

    # (1) tight check against a bf16-operand / f32-accumulate reference that
    #     matches the kernel numerics exactly (validates fold + kernel).
    x = literals.reshape(n_pairs, 2 * size)
    y_ref = jnp.dot(x.astype(jnp.bfloat16), wt_fold,
                    preferred_element_type=jnp.float32) + b_fold
    ref_bf16 = jnp.maximum(y_ref, 0.0)[:, : 2 * size].reshape(2 * n_pairs, size)
    assert jnp.allclose(out, ref_bf16, atol=1e-4, rtol=1e-4)

    # (2) loose check against the original f32 join -> Linear -> ReLU -> unjoin
    #     path (bf16 operand rounding => looser tolerance than before).
    ref_f32 = inverse_join_literals_ref(
        jnp.maximum(join_literals_ref(literals) @ w.T + b, 0.0)
    )
    assert jnp.allclose(out, ref_f32, atol=5e-2, rtol=5e-2)

    print("KERNEL_OK")
</pallas_src>

<mosaic_0001>
module attributes {stable_mosaic.version = 11 : i64} {
  func.func @_kernel_single_k(%arg0: i32, %arg1: i32, %arg2: i32, %arg3: memref<8x128xf32, #tpu.memory_space<vmem>>, %arg4: memref<128x128xbf16, #tpu.memory_space<vmem>>, %arg5: memref<1x128xf32, #tpu.memory_space<vmem>>, %arg6: memref<8x128xf32, #tpu.memory_space<vmem>>) attributes {dimension_semantics = [#tpu.dimension_semantics<parallel>, #tpu.dimension_semantics<parallel>, #tpu.dimension_semantics<arbitrary>], iteration_bounds = array<i64: 1, 1, 1>, scalar_prefetch = 0 : i64, scratch_operands = 0 : i64, tpu.core_type = #tpu.core_type<tc>, window_params = [{transform_indices = @transform_0, window_bounds = array<i64: 8, 128>}, {transform_indices = @transform_1, window_bounds = array<i64: 128, 128>}, {transform_indices = @transform_2, window_bounds = array<i64: 1, 128>}, {transform_indices = @transform_3, window_bounds = array<i64: 8, 128>}]} {
    %c0 = arith.constant 0 : index
    %c0_0 = arith.constant 0 : index
    %0 = vector.load %arg3[%c0, %c0_0] : memref<8x128xf32, #tpu.memory_space<vmem>>, vector<8x128xf32>
    %1 = arith.truncf %0 : vector<8x128xf32> to vector<8x128xbf16>
    %c0_1 = arith.constant 0 : index
    %c0_2 = arith.constant 0 : index
    %2 = vector.load %arg4[%c0_1, %c0_2] : memref<128x128xbf16, #tpu.memory_space<vmem>>, vector<128x128xbf16>
    %cst = arith.constant dense<0.000000e+00> : vector<8x128xf32>
    %3 = tpu.matmul %1, %2, %cst {dimension_numbers = #tpu.dot_dimension_numbers<[1], [0], [0], [1], [0, 0, 1, 1], [], []>} : vector<8x128xbf16>, vector<128x128xbf16>, vector<8x128xf32> -> vector<8x128xf32>
    %c0_3 = arith.constant 0 : index
    %c0_4 = arith.constant 0 : index
    %4 = vector.load %arg5[%c0_3, %c0_4] : memref<1x128xf32, #tpu.memory_space<vmem>>, vector<1x128xf32>
    %5 = vector.broadcast %4 : vector<1x128xf32> to vector<8x128xf32>
    %6 = arith.addf %3, %5 : vector<8x128xf32>
    %cst_5 = arith.constant 0.000000e+00 : f32
    %7 = vector.broadcast %cst_5 : f32 to vector<8x128xf32>
    %8 = arith.maximumf %6, %7 : vector<8x128xf32>
    %c0_6 = arith.constant 0 : index
    %c0_7 = arith.constant 0 : index
    %9 = vector.load %arg6[%c0_6, %c0_7] : memref<8x128xf32, #tpu.memory_space<vmem>>, vector<8x128xf32>
    tpu.vector_store %arg6[%c0_6, %c0_7], %8 {strides = array<i32>} : memref<8x128xf32, #tpu.memory_space<vmem>>, vector<8x128xf32>,
    return
  }
  func.func @transform_0(%arg0: i32, %arg1: i32, %arg2: i32) -> (i32, i32) {
    %c0_i32 = arith.constant 0 : i32
    return %arg0, %arg2 : i32, i32
  }
  func.func @transform_1(%arg0: i32, %arg1: i32, %arg2: i32) -> (i32, i32) {
    %c0_i32 = arith.constant 0 : i32
    return %arg2, %arg1 : i32, i32
  }
  func.func @transform_2(%arg0: i32, %arg1: i32, %arg2: i32) -> (i32, i32) {
    %c0_i32 = arith.constant 0 : i32
    %c0_i32_0 = arith.constant 0 : i32
    return %c0_i32, %arg1 : i32, i32
  }
  func.func @transform_3(%arg0: i32, %arg1: i32, %arg2: i32) -> (i32, i32) {
    %c0_i32 = arith.constant 0 : i32
    return %arg0, %arg1 : i32, i32
  }
}

</mosaic_0001>

<bundles_post_ra>
// kernel: literals_message_full.1
= control target key start
LH: loop header
LB: loop body
LE: loop exit
PB: predicated region body
PF: predicated region fallthrough
CT: control target
= control target key end

     0   :  { %8 = vsyncpa [#allocation3], 0  ;;  %s190_s15 = smov [#allocation2]   ;;  %s191_s17 = smov 64   ;;  %s225_s0 = inlined_call_operand.vmem [shape: f32[8,128], index: 0, kind: input, shape index: {}]   ;;  %s226_s1 = inlined_call_operand.hbm [shape: bf16[128,128], index: 1, kind: input, shape index: {}]   ;;  %s227_s2 = inlined_call_operand.vmem [shape: f32[1,128], index: 2, kind: input, shape index: {}]   ;;  %s228_s3 = inlined_call_operand.vmem [shape: f32[8,128], index: 3, kind: output, shape index: {}]  }
   0x1   :  { %s15_s14 = sshll.u32 %s226_s1, 4  ;;  %s17_s16 = sshll.u32 %s190_s15, 4  ;;  %s16_s14 = int_to_ptr.hbm [resolvable:$true] %s15_s14  ;;  %s18_s16 = int_to_ptr.vmem [resolvable:$true] %s17_s16 }
   0x2   :  { %s192_s18 = smov 4  }
   0x3   :  { %23 = dma.hbm_to_vmem [thread:$0]  %s16_s14, 1024, %s18_s16, [#allocation3], %s191_s17, %s191_s17, %s192_s18  }
   0x4   :  { %188 = dma.done.wait [#allocation3], 1024  }
   0x5   :  { %189 = vsyncadd [#allocation3], 4294966272  ;;  %v159_v0 = vld [vmem:[#allocation2 + $0x38] sm:$0xff]  ;;  %v158_v1 = vld [vmem:[#allocation2 + $0x30] sm:$0xff] }
   0x6   :  { %100 = vmatpush.bf16.msra.mxu0 %v159_v0  ;;  %v157_v2 = vld [vmem:[#allocation2 + $0x28] sm:$0xff]  ;;  %v156_v3 = vld [vmem:[#allocation2 + $0x20] sm:$0xff]  ;;  %v155_v4 = vld [vmem:[#allocation2 + $0x18] sm:$0xff] }
   0x7   :  { %v154_v5 = vld [vmem:[#allocation2 + $0x10] sm:$0xff]  ;;  %v153_v6 = vld [vmem:[#allocation2 + $0x8] sm:$0xff]  ;;  %v152_v7 = vld [vmem:[#allocation2] sm:$0xff] }
   0x8   :  { %v30_v8 = vld [vmem:[%s225_s0] sm:$0xff] }
   0x9   :  { %v31_v9 = vpack.c.bf16 %v30_v8, %v30_v8  ;;  %v163_v10 = vld [vmem:[%s227_s2] ss:$0 sm:$0xff] }
   0xa   :  { %101 = vmatpush.bf16.msra.mxu0 %v158_v1 }
   0xe   :  { %102 = vmatpush.bf16.msra.mxu0 %v157_v2 }
  0x12   :  { %103 = vmatpush.bf16.msra.mxu0 %v156_v3 }
  0x16   :  { %104 = vmatpush.bf16.msra.mxu0 %v155_v4 }
  0x1a   :  { %105 = vmatpush.bf16.msra.mxu0 %v154_v5 }
  0x1e   :  { %106 = vmatpush.bf16.msra.mxu0 %v153_v6 }
  0x22   :  { %107 = vmatpush.bf16.msra.mxu0 %v152_v7 }
  0x25   :  { %108 = vmatmul.bf16.vlgmr.msra.gmra.mxu0 %v31_v9 }
  0xa2   :  { %v109_v11 = vpop.f32.mrf.mxu0 }
  0xa3   :  { %v110_v12 = vadd.f32 %v163_v10, %v109_v11 }
  0xa5   :  { %v113_v13 = vmax.f32 %v110_v12, 0.0 }
  0xa7   :  { %114 = vst [vmem:[%s228_s3] sm:$0xff] %v113_v13 }
  0xaa   :  { %v111_v14 = vpop.f32.mrf.mxu0 }
  0xab   :  { %119 = vsyncpa [#allocation3], 1 }

</bundles_post_ra>
